<compile_context>
chip_gen: v7x
topology: tpu7x:2x2x1
jax: 0.10.0
libtpu: 0.0.40
codegen_flags: <defaults>
</compile_context>

<pallas_src>
import jax
import jax.numpy as jnp
from jax.experimental import pallas as pl
from jax.experimental.pallas import tpu as pltpu


def _round_up(x, m):
    return (x + m - 1) // m * m


def _padded_vmem_bytes(rows, cols, itemsize):
    """Upper bound on the VMEM footprint of a (rows, cols) buffer.

    VMEM buffers are laid out in (8, 128) tiles; sub-32-bit dtypes pack along
    sublanes, so this round-up is an upper bound for them too.
    """
    return _round_up(max(rows, 1), 8) * _round_up(max(cols, 1), 128) * itemsize


def _physical_vmem_bytes():
    phys = 64 << 20  # conservative fallback = v7x per-TensorCore VMEM
    try:
        info = pltpu.get_tpu_info()
        phys = int(getattr(info, "vmem_capacity_bytes", phys)) or phys
    except Exception:
        pass
    return phys


def _choose_block_b(batch, in_features, num_out, itemsize, usable_vmem):
    """Largest legal batch tile (multiple of 128, or full extent) that fits."""
    per_row = (2 * _round_up(in_features, 128) * itemsize   # x, double-buffered
               + 2 * _round_up(num_out, 128) * itemsize     # out, double-buffered
               + _round_up(num_out, 128) * 4)               # f32 matmul result
    fixed = (2 * _padded_vmem_bytes(in_features, num_out, itemsize)  # resident W (K,N)
             + 2 * _padded_vmem_bytes(1, num_out, 4))                # resident f32 bias
    avail = max(usable_vmem - fixed, 128 * per_row)
    cap = max(128, (avail // per_row) // 128 * 128)
    # Diminishing returns past ~16 MiB per x buffer (beyond the measured HBM
    # roofline knee on v5e/v6e/v7x); also bounds compile-time pressure.
    cap = min(cap, max(128, ((16 << 20) // (in_features * itemsize)) // 128 * 128))

    if batch <= cap:
        if batch < 1024:
            return batch  # single full-extent tile
        # Large batch that still fits one tile: keep >= 4 grid steps so the
        # "parallel" batch axis shards across both v7x TensorCores.
        return min(cap, max(256, _round_up(pl.cdiv(batch, 4), 128)))

    tb = cap
    while tb > 256 and pl.cdiv(batch, tb) < 4:
        tb = max(128, (tb // 2) // 128 * 128)
    return tb


def _value_head_kernel(x_ref, w_ref, b_ref, o_ref):
    """y_tile = x_tile @ W_kn + b, with W_kn = W.T presented as (K, N).

    x_ref: (TB, K) VMEM        w_ref: (K, N) VMEM (resident across tiles)
    b_ref: (1, N) f32 VMEM     o_ref: (TB, N) VMEM
    """
    acc = jnp.dot(x_ref[...], w_ref[...], preferred_element_type=jnp.float32)
    o_ref[...] = (acc + b_ref[...]).astype(o_ref.dtype)


def state_value_head(x, weight, bias, *, block_b=None):
    """Forward pass of StateValueHead: y = x @ weight.T + bias.

    Args:
      x:      (B, in_features)
      weight: (num_out, in_features)   -- PyTorch Linear layout
      bias:   (num_out,)
      block_b: optional batch-tile override (testing / tuning).
    Returns:
      (B, num_out) in x.dtype.
    """
    B, K = x.shape
    N = weight.shape[0]
    itemsize = jnp.dtype(x.dtype).itemsize

    phys_vmem = _physical_vmem_bytes()
    usable_vmem = (phys_vmem * 3) // 4  # headroom for compiler-internal scratch
    TB = block_b if block_b is not None else _choose_block_b(B, K, N, itemsize, usable_vmem)
    grid = (pl.cdiv(B, TB),)

    # MXU-native RHS: tiny one-pass (N x K) transpose in the wrapper; for the
    # common num_out == 1 case this is effectively a metadata-only reshape.
    w_kn = weight.astype(x.dtype).T                 # (K, N)
    b_row = bias.astype(jnp.float32).reshape(1, N)  # f32 bias row

    need = (2 * _padded_vmem_bytes(TB, K, itemsize)    # x, double-buffered
            + 2 * _padded_vmem_bytes(TB, N, itemsize)  # out, double-buffered
            + _padded_vmem_bytes(TB, N, 4)             # f32 accumulator
            + 2 * _padded_vmem_bytes(K, N, itemsize)   # resident weight
            + 2 * _padded_vmem_bytes(1, N, 4))         # resident bias
    vmem_limit = int(min(phys_vmem * 9 // 10, max(need + (8 << 20), 16 << 20)))

    return pl.pallas_call(
        _value_head_kernel,
        out_shape=jax.ShapeDtypeStruct((B, N), x.dtype),
        grid=grid,
        in_specs=[
            pl.BlockSpec((TB, K), lambda i: (i, 0)),   # streaming x tile
            pl.BlockSpec((K, N), lambda i: (0, 0)),    # weight, resident
            pl.BlockSpec((1, N), lambda i: (0, 0)),    # f32 bias row, resident
        ],
        out_specs=pl.BlockSpec((TB, N), lambda i: (i, 0)),
        compiler_params=pltpu.CompilerParams(
            dimension_semantics=("parallel",),
            vmem_limit_bytes=vmem_limit,
        ),
    )(x, w_kn, b_row)


if __name__ == "__main__":
    key = jax.random.PRNGKey(0)
    B, in_features, num_out = 8, 32, 1

    x = jax.random.normal(key, (B, in_features), dtype=jnp.float32)

    # Deterministic parameter init per the module's reset_weights(): zeros.
    weight = jnp.zeros((num_out, in_features), dtype=jnp.float32)
    bias = jnp.zeros((num_out,), dtype=jnp.float32)

    y = jax.block_until_ready(state_value_head(x, weight, bias))
    assert y.shape == (B, num_out)
    assert jnp.allclose(y, x @ weight.T + bias, atol=1e-6), "mismatch (zero init)"

    # Nonzero parameters, num_out == 1 (MXU path with (K, 1) RHS).
    k1, k2, k3, k4 = jax.random.split(key, 4)
    w1 = jax.random.normal(k1, (num_out, in_features), dtype=jnp.float32)
    b1 = jax.random.normal(k2, (num_out,), dtype=jnp.float32)
    y1 = jax.block_until_ready(state_value_head(x, w1, b1))
    assert jnp.allclose(y1, x @ w1.T + b1, atol=1e-5, rtol=1e-5), "mismatch (num_out=1)"

    # num_out > 1 path.
    n_multi = 4
    wm = jax.random.normal(k3, (n_multi, in_features), dtype=jnp.float32)
    bm = jax.random.normal(k4, (n_multi,), dtype=jnp.float32)
    ym = jax.block_until_ready(state_value_head(x, wm, bm))
    assert ym.shape == (B, n_multi)
    assert jnp.allclose(ym, x @ wm.T + bm, atol=1e-5, rtol=1e-5), "mismatch (num_out=4)"

    # Ragged batch: B not a multiple of the (forced) batch tile -> partial
    # last block whose out-of-bounds rows must be dropped.
    B2, K2 = 300, 128
    kx, kw, kb = jax.random.split(k1, 3)
    x2 = jax.random.normal(kx, (B2, K2), dtype=jnp.float32)
    w2 = jax.random.normal(kw, (1, K2), dtype=jnp.float32)
    b2 = jax.random.normal(kb, (1,), dtype=jnp.float32)
    y2 = jax.block_until_ready(state_value_head(x2, w2, b2, block_b=128))
    assert y2.shape == (B2, 1)
    assert jnp.allclose(y2, x2 @ w2.T + b2, atol=1e-4, rtol=1e-4), "mismatch (ragged B)"

    print("KERNEL_OK")
</pallas_src>

<mosaic_0001>
module attributes {stable_mosaic.version = 11 : i64} {
  func.func @_value_head_kernel(%arg0: i32, %arg1: memref<8x32xf32, #tpu.memory_space<vmem>>, %arg2: memref<32x1xf32, #tpu.memory_space<vmem>>, %arg3: memref<1x1xf32, #tpu.memory_space<vmem>>, %arg4: memref<8x1xf32, #tpu.memory_space<vmem>>) attributes {dimension_semantics = [#tpu.dimension_semantics<parallel>], iteration_bounds = array<i64: 1>, scalar_prefetch = 0 : i64, scratch_operands = 0 : i64, tpu.core_type = #tpu.core_type<tc>, window_params = [{transform_indices = @transform_0, window_bounds = array<i64: 8, 32>}, {pipeline_mode = #tpu.pipeline_mode<synchronous>, transform_indices = @transform_1, window_bounds = array<i64: 32, 1>}, {pipeline_mode = #tpu.pipeline_mode<synchronous>, transform_indices = @transform_2, window_bounds = array<i64: 1, 1>}, {transform_indices = @transform_3, window_bounds = array<i64: 8, 1>}]} {
    %c0 = arith.constant 0 : index
    %c0_0 = arith.constant 0 : index
    %0 = vector.load %arg1[%c0, %c0_0] : memref<8x32xf32, #tpu.memory_space<vmem>>, vector<8x32xf32>
    %c0_1 = arith.constant 0 : index
    %c0_2 = arith.constant 0 : index
    %1 = vector.load %arg2[%c0_1, %c0_2] : memref<32x1xf32, #tpu.memory_space<vmem>>, vector<32x1xf32>
    %cst = arith.constant dense<0.000000e+00> : vector<8x1xf32>
    %2 = tpu.matmul %0, %1, %cst {dimension_numbers = #tpu.dot_dimension_numbers<[1], [0], [0], [1], [0, 0, 1, 1], [], []>} : vector<8x32xf32>, vector<32x1xf32>, vector<8x1xf32> -> vector<8x1xf32>
    %c0_3 = arith.constant 0 : index
    %c0_4 = arith.constant 0 : index
    %3 = vector.load %arg3[%c0_3, %c0_4] : memref<1x1xf32, #tpu.memory_space<vmem>>, vector<1x1xf32>
    %4 = vector.broadcast %3 : vector<1x1xf32> to vector<8x1xf32>
    %5 = arith.addf %2, %4 : vector<8x1xf32>
    %c0_5 = arith.constant 0 : index
    %c0_6 = arith.constant 0 : index
    %6 = vector.load %arg4[%c0_5, %c0_6] : memref<8x1xf32, #tpu.memory_space<vmem>>, vector<8x1xf32>
    tpu.vector_store %arg4[%c0_5, %c0_6], %5 {strides = array<i32>} : memref<8x1xf32, #tpu.memory_space<vmem>>, vector<8x1xf32>,
    return
  }
  func.func @transform_0(%arg0: i32) -> (i32, i32) {
    %c0_i32 = arith.constant 0 : i32
    %c0_i32_0 = arith.constant 0 : i32
    return %arg0, %c0_i32 : i32, i32
  }
  func.func @transform_1(%arg0: i32) -> (i32, i32) {
    %c0_i32 = arith.constant 0 : i32
    %c0_i32_0 = arith.constant 0 : i32
    %c0_i32_1 = arith.constant 0 : i32
    return %c0_i32, %c0_i32_0 : i32, i32
  }
  func.func @transform_2(%arg0: i32) -> (i32, i32) {
    %c0_i32 = arith.constant 0 : i32
    %c0_i32_0 = arith.constant 0 : i32
    %c0_i32_1 = arith.constant 0 : i32
    return %c0_i32, %c0_i32_0 : i32, i32
  }
  func.func @transform_3(%arg0: i32) -> (i32, i32) {
    %c0_i32 = arith.constant 0 : i32
    %c0_i32_0 = arith.constant 0 : i32
    return %arg0, %c0_i32 : i32, i32
  }
}

</mosaic_0001>

<bundles_post_ra>
// kernel: tpu_custom_call.1
= control target key start
LH: loop header
LB: loop body
LE: loop exit
PB: predicated region body
PF: predicated region fallthrough
CT: control target
= control target key end

     0   :  { %v135_v0 = vmov 0.0|0.0   ;;  %vm136_vm0 = vmmov 0   ;;  %v137_v4 = vmov 0.0   ;;  %vm28_vm1 = vcmask 261120   ;;  %s179_s1 = inlined_call_operand.vmem [shape: f32[32,1], index: 1, kind: input, shape index: {}]   ;;  %s180_s2 = inlined_call_operand.<no memory space> [shape: f32[1,1], index: 2, kind: input, shape index: {}]   ;;  %s181_s0 = inlined_call_operand.vmem [shape: f32[8,32], index: 0, kind: input, shape index: {}]   ;;  %s182_s3 = inlined_call_operand.vmem [shape: f32[8,1], index: 3, kind: output, shape index: {}]  }
   0x1   :  { %126 = vmatprep.subr.bf16.mxu0 %v135_v0  ;;  %v17_v1 = vld [vmem:[%s179_s1] sm:$0xff]  ;;  %v18_v2 = vld [vmem:[%s179_s1 + $0x8] sm:$0xff]  ;;  %v19_v3 = vld [vmem:[%s179_s1 + $0x10] sm:$0xff]  ;;  %123 = vmatprep.mubr.msk.f32.mxu0 %vm136_vm0, %v137_v4  ;;  %v8_v5 = vstv %s180_s2  ;;  %vm102_vm2 = vcmask 7168  }
   0x2   :  { %v127_v6 = vpack.c.bf16 %v18_v2, %v17_v1  ;;  %v20_v7 = vld [vmem:[%s179_s1 + $0x18] sm:$0xff]  ;;  %9 = vst [vmem:[#allocation2] sm:$0x1] %v8_v5  ;;  %v16_v9 = vld [vmem:[%s181_s0] sm:$0xff] }
   0x3   :  { %v130_v8 = vpack.c.bf16 %v20_v7, %v19_v3 }
   0x4   :  { %128 = vmatpush3.bf16.msra.mxu0 %v127_v6 }
   0x5   :  { %129 = vmatprep.subr.bf16.mxu0 %v135_v0 }
   0x8   :  { %131 = vmatpush3.bf16.msra.mxu0 %v130_v8 }
   0x9   :  { %v108_v10 = vld [vmem:[#allocation2] ss:$0 sm:$0xff] }
   0xb   :  { %124 = vmatmul.mubr.msk.f32.vlgmr.msra.gmra.mrb[0].mxu0 %vm28_vm1, %v16_v9 }
  0xde   :  { %v98_v11 = vpop.f32.mrb[0].mxu0 }
  0xdf   :  { %v99_v12 = vadd.f32 %v108_v10, %v98_v11  ;;  %v125_v13 = vpop.f32.mrb[1].mxu0 }
  0xe1   :  { %103 = vst.msk [vmem:[%s182_s3] sm:$0xff] %vm102_vm2, %v99_v12 }

</bundles_post_ra>
